<compile_context>
chip_gen: v6e
topology: v6e:2x2x1
jax: 0.10.0
libtpu: 0.0.40
codegen_flags: <defaults>
</compile_context>

<pallas_src>
import jax
import jax.numpy as jnp
from jax.experimental import pallas as pl
from jax.experimental.pallas import tpu as pltpu


def _mkce_kernel(x_ref, w_ref, add_ref, o_ref):
    # x_ref   : (C, w_tile)        k-space columns of ONE slice (native dtype)
    # w_ref   : (dim1_p, C)        conv1d (kernel_size=1) weight, resident
    # add_ref : (dim1_p, w_tile)   fused bias + position-emb + mask-emb (f32)
    # o_ref   : (dim1_p, w_tile)   f32 output tile
    x = x_ref[...]
    if x.dtype != w_ref.dtype:
        x = x.astype(w_ref.dtype)          # in-kernel cast (VPU has slack)
    y = jnp.dot(w_ref[...], x, preferred_element_type=jnp.float32)
    o_ref[...] = (y + add_ref[...]).astype(o_ref.dtype)


def masked_kspace_column_embedding(kspace, col_mask, conv_w, conv_b,
                                   pos_table, mask_table,
                                   *, max_w_tile=2048,
                                   compute_dtype=jnp.float32):
    """kspace: (n_slices, 2, H, W); col_mask squeezes to (W,) of {0,1}.
    conv_w: (dim1, 2H); conv_b: (dim1,); pos_table: (W, dim1); mask_table: (2, dim1).
    Returns (n_slices, dim1, W) float32 — same as the PyTorch module."""
    n_slices, two, H, W = kspace.shape
    C = two * H
    dim1 = conv_w.shape[0]
    assert int(col_mask.size) == W, "col_mask must squeeze to exactly (W,)"

    # ---- slice-invariant additive epilogue, precomputed once (f32) ---------
    # TODO(synk): nn.Embedding would raise on non-{0,1} mask ids; we clamp.
    mask_ids = jnp.clip(col_mask.reshape(W).astype(jnp.int32), 0, 1)
    addend = (pos_table.astype(jnp.float32).T                      # (dim1, W)
              + conv_b.astype(jnp.float32)[:, None]                # conv bias
              + mask_table.astype(jnp.float32)[mask_ids].T)        # mask emb

    # ---- alignment padding: dim1 -> x8 (sublane), W -> x128 (lane) ---------
    dim1_p = ((dim1 + 7) // 8) * 8
    W_p = ((W + 127) // 128) * 128

    w_mat = conv_w.astype(compute_dtype)                           # (dim1, C)
    if dim1_p != dim1:
        w_mat = jnp.pad(w_mat, ((0, dim1_p - dim1), (0, 0)))
        addend = jnp.pad(addend, ((0, dim1_p - dim1), (0, 0)))
    x = kspace.reshape(n_slices, C, W)                             # view, no copy
    if W_p != W:
        x = jnp.pad(x, ((0, 0), (0, 0), (0, W_p - W)))
        addend = jnp.pad(addend, ((0, 0), (0, W_p - W)))

    # ---- lane tile: largest x128 divisor of W_p under the VMEM budget ------
    x_itemsize = jnp.dtype(x.dtype).itemsize
    bytes_per_lane = (2 * C * x_itemsize     # double-buffered kspace tile
                      + 2 * dim1_p * 4       # addend tile
                      + 2 * dim1_p * 4)      # output tile
    vmem_budget = 24 * 1024 * 1024           # safe under 32 MiB scoped default
    cap = (min(max_w_tile, max(128, vmem_budget // bytes_per_lane)) // 128) * 128
    cap = max(cap, 128)
    w_tile = 128
    t = min(W_p, cap)
    while t >= 128:
        if W_p % t == 0:
            w_tile = t
            break
        t -= 128
    grid = (W_p // w_tile, n_slices)         # W-tiles OUTER, slices inner

    w_itemsize = jnp.dtype(compute_dtype).itemsize
    cost = pl.CostEstimate(
        flops=2 * dim1_p * C * n_slices * W_p,
        transcendentals=0,
        bytes_accessed=(n_slices * C * W_p * x_itemsize   # kspace (read once)
                        + dim1_p * C * w_itemsize         # resident weight
                        + dim1_p * W_p * 4                # un-tiled addend
                        + n_slices * dim1_p * W_p * 4))   # f32 output

    out = pl.pallas_call(
        _mkce_kernel,
        out_shape=jax.ShapeDtypeStruct((n_slices, dim1_p, W_p), jnp.float32),
        grid=grid,
        in_specs=[
            # one slice's columns per grid step; slice dim squeezed out
            pl.BlockSpec((None, C, w_tile), lambda l, s: (s, 0, l)),
            # tiny weight, resident across the whole grid
            pl.BlockSpec((dim1_p, C), lambda l, s: (0, 0)),
            # slice-invariant addend: same block for all s at a given l
            pl.BlockSpec((dim1_p, w_tile), lambda l, s: (0, l)),
        ],
        out_specs=pl.BlockSpec((None, dim1_p, w_tile), lambda l, s: (s, 0, l)),
        compiler_params=pltpu.CompilerParams(
            dimension_semantics=("parallel", "parallel")),
        cost_estimate=cost,
    )(x, w_mat, addend)

    # strip alignment padding -> module's (n_slices, dim1, W) layout
    return out[:, :dim1, :W]


def _reference(kspace, col_mask, conv_w, conv_b, pos_table, mask_table):
    n_slices, two, H, W = kspace.shape
    x = kspace.reshape(n_slices, two * H, W).astype(jnp.float32)
    proj = (jnp.einsum('dc,ncw->ndw', conv_w.astype(jnp.float32), x)
            + conv_b.astype(jnp.float32)[None, :, None])
    pos = pos_table.astype(jnp.float32).T[None]                    # (1, dim1, W)
    mask_ids = col_mask.reshape(W).astype(jnp.int32)
    mask_emb = mask_table.astype(jnp.float32)[mask_ids].T[None]    # (1, dim1, W)
    return proj + mask_emb + pos


def _run_case(key, n_slices, H, W, dim1):
    C = 2 * H
    k_ks, k_w, k_b, k_pos, k_mtab, k_mask = jax.random.split(key, 6)
    kspace = jax.random.normal(k_ks, (n_slices, 2, H, W), dtype=jnp.float32)
    col_mask = (jax.random.uniform(k_mask, (1, W)) > 0.5).astype(jnp.float32)
    conv_w = jax.random.normal(k_w, (dim1, C), dtype=jnp.float32) * 0.05
    conv_b = jax.random.normal(k_b, (dim1,), dtype=jnp.float32) * 0.05
    pos_table = jax.random.normal(k_pos, (W, dim1), dtype=jnp.float32)
    mask_table = jax.random.normal(k_mtab, (2, dim1), dtype=jnp.float32)

    out = masked_kspace_column_embedding(
        kspace, col_mask, conv_w, conv_b, pos_table, mask_table)
    out = jax.block_until_ready(out)

    ref = _reference(kspace, col_mask, conv_w, conv_b, pos_table, mask_table)
    assert out.shape == (n_slices, dim1, W), out.shape
    err = float(jnp.max(jnp.abs(out - ref)))
    assert jnp.allclose(out, ref, atol=1e-4, rtol=1e-4), err


if __name__ == "__main__":
    root = jax.random.PRNGKey(0)
    k1, k2 = jax.random.split(root)
    # Aligned small case (module-consistent): dim1=32, H=16 (C=32), W=128.
    _run_case(k1, n_slices=2, H=16, W=128, dim1=32)
    # Unaligned case exercising dim1->x8 and W->x128 padding paths.
    _run_case(k2, n_slices=3, H=12, W=144, dim1=20)
    print("KERNEL_OK")
</pallas_src>

<mosaic_0001>
module attributes {stable_mosaic.version = 11 : i64} {
  func.func @_mkce_kernel(%arg0: i32, %arg1: i32, %arg2: memref<1x32x128xf32, #tpu.memory_space<vmem>>, %arg3: memref<32x32xf32, #tpu.memory_space<vmem>>, %arg4: memref<32x128xf32, #tpu.memory_space<vmem>>, %arg5: memref<1x32x128xf32, #tpu.memory_space<vmem>>) attributes {dimension_semantics = [#tpu.dimension_semantics<parallel>, #tpu.dimension_semantics<parallel>], iteration_bounds = array<i64: 1, 2>, scalar_prefetch = 0 : i64, scratch_operands = 0 : i64, tpu.core_type = #tpu.core_type<tc>, window_params = [{transform_indices = @transform_0, window_bounds = array<i64: 1, 32, 128>}, {pipeline_mode = #tpu.pipeline_mode<synchronous>, transform_indices = @transform_1, window_bounds = array<i64: 32, 32>}, {transform_indices = @transform_2, window_bounds = array<i64: 32, 128>}, {transform_indices = @transform_3, window_bounds = array<i64: 1, 32, 128>}]} {
    %c0 = arith.constant 0 : index
    %c0_0 = arith.constant 0 : index
    %c0_1 = arith.constant 0 : index
    %0 = vector.load %arg2[%c0, %c0_0, %c0_1] : memref<1x32x128xf32, #tpu.memory_space<vmem>>, vector<1x32x128xf32>
    %1 = vector.shape_cast %0 : vector<1x32x128xf32> to vector<32x128xf32>
    %c0_2 = arith.constant 0 : index
    %c0_3 = arith.constant 0 : index
    %2 = vector.load %arg3[%c0_2, %c0_3] : memref<32x32xf32, #tpu.memory_space<vmem>>, vector<32x32xf32>
    %cst = arith.constant dense<0.000000e+00> : vector<32x128xf32>
    %3 = tpu.matmul %2, %1, %cst {dimension_numbers = #tpu.dot_dimension_numbers<[1], [0], [0], [1], [0, 0, 1, 1], [], []>} : vector<32x32xf32>, vector<32x128xf32>, vector<32x128xf32> -> vector<32x128xf32>
    %c0_4 = arith.constant 0 : index
    %c0_5 = arith.constant 0 : index
    %4 = vector.load %arg4[%c0_4, %c0_5] : memref<32x128xf32, #tpu.memory_space<vmem>>, vector<32x128xf32>
    %5 = arith.addf %3, %4 : vector<32x128xf32>
    %c0_6 = arith.constant 0 : index
    %c0_7 = arith.constant 0 : index
    %c0_8 = arith.constant 0 : index
    %6 = vector.load %arg5[%c0_6, %c0_7, %c0_8] : memref<1x32x128xf32, #tpu.memory_space<vmem>>, vector<1x32x128xf32>
    %7 = vector.shape_cast %6 : vector<1x32x128xf32> to vector<32x128xf32>
    %8 = vector.shape_cast %5 : vector<32x128xf32> to vector<1x32x128xf32>
    tpu.vector_store %arg5[%c0_6, %c0_7, %c0_8], %8 {strides = array<i32>} : memref<1x32x128xf32, #tpu.memory_space<vmem>>, vector<1x32x128xf32>,
    return
  }
  func.func @transform_0(%arg0: i32, %arg1: i32) -> (i32, i32, i32) {
    %c0_i32 = arith.constant 0 : i32
    %c0_i32_0 = arith.constant 0 : i32
    return %arg1, %c0_i32, %arg0 : i32, i32, i32
  }
  func.func @transform_1(%arg0: i32, %arg1: i32) -> (i32, i32) {
    %c0_i32 = arith.constant 0 : i32
    %c0_i32_0 = arith.constant 0 : i32
    %c0_i32_1 = arith.constant 0 : i32
    return %c0_i32, %c0_i32_0 : i32, i32
  }
  func.func @transform_2(%arg0: i32, %arg1: i32) -> (i32, i32) {
    %c0_i32 = arith.constant 0 : i32
    %c0_i32_0 = arith.constant 0 : i32
    return %c0_i32, %arg0 : i32, i32
  }
  func.func @transform_3(%arg0: i32, %arg1: i32) -> (i32, i32, i32) {
    %c0_i32 = arith.constant 0 : i32
    %c0_i32_0 = arith.constant 0 : i32
    return %arg1, %c0_i32, %arg0 : i32, i32, i32
  }
}

</mosaic_0001>

<bundles_post_ra>
// kernel: tpu_custom_call.1
= control target key start
LH: loop header
LB: loop body
LE: loop exit
PB: predicated region body
PF: predicated region fallthrough
CT: control target
= control target key end

     0   :  { %8 = vsyncpa [#allocation3], 0  ;;  %s1014_s0 = inlined_call_operand.hbm [shape: f32[2,32,128], index: 0, kind: input, shape index: {}]   ;;  %s1015_s1 = inlined_call_operand.hbm [shape: f32[32,32], index: 1, kind: input, shape index: {}]   ;;  %s1016_s2 = inlined_call_operand.hbm [shape: f32[32,128], index: 2, kind: input, shape index: {}]   ;;  %s1017_s3 = inlined_call_operand.hbm [shape: f32[2,32,128], index: 3, kind: output, shape index: {}]  }
   0x1   :  { %10 = vsyncpa [#allocation3 + $0x1], 0 }
   0x2   :  { %11 = vsyncpa [#allocation6], 0 }
   0x3   :  { %12 = vsyncpa [#allocation4], 0 }
   0x4   :  { %14 = vsyncpa [#allocation4 + $0x1], 0  ;;  %s813_s12 = smov 0   ;;  %s815_s13 = smov 0  }
   0x5   :  { %s817_s14 = smov 0   ;;  %s819_s15 = smov 0  }
   0x6   :  { %s821_s16 = smov 0   ;;  %s823_s17 = smov 0  }
   0x7 LB: > { %s477_s18 = sadd.s32 4294967295, %s783_s17   ;;  %s478_s19 = sadd.s32 4294967294, %s783_s17   ;;  %s783_s17 = sphi %s823_s17, %s20_s17   ;;  %s779_s16 = sphi %s821_s16, %s1034_s16   ;;  %s775_s15 = sphi %s819_s15, %s1033_s15   ;;  %s771_s14 = sphi %s817_s14, %s1032_s14   ;;  %s767_s13 = sphi %s815_s13, %s1031_s13   ;;  %s763_s12 = sphi %s813_s12, %s1030_s12  }
   0x8   : > { %p54_p0 = scmp.ne.s32.totalorder %s767_s13, %s763_s12  ;;  %p847_p1 = scmp.eq.s32.totalorder %s477_s18, 0 }
   0x9   : > { %p851_p2 = scmp.eq.s32.totalorder %s477_s18, 1  ;;  %p133_p3 = scmp.eq.s32.totalorder %s478_s19, 1 }
   0xa   : > { %p857_p4 = por %p847_p1, %p54_p0  ;;  %p479_p5 = scmp.ge.s32.totalorder %s783_s17, 1 }
   0xb   : > { %p862_p6 = por %p133_p3, %p54_p0  ;;  %p140_p7 = scmp.lt.s32.totalorder %s783_s17, 3 }
   0xc   : > { %s785_s25 = smov [#allocation5]   ;;  %s786_s28 = smov [#allocation7]  }
   0xd   : > { %s1022_s23 = scalar_select %p862_p6, 1, 0 }
   0xe   : > { %p867_p8 = pnand %p479_p5, %p140_p7  ;;  %s152_s26 = sshll.u32 %s785_s25, 4  ;;  %s153_s26 = int_to_ptr.vmem [resolvable:$true] %s152_s26 }
   0xf   : > { %s167_s29 = sshll.u32 %s786_s28, 4  ;;  %s630_s30 = scalar_lea.vmem %s153_s26, 512  ;;  %s168_s29 = int_to_ptr.vmem [resolvable:$true] %s167_s29 }
  0x10   : > { %p544_p9 = pneg %p867_p8  ;;  %p631_p13 = scmp.ne.s32.totalorder %s153_s26, %s630_s30 }
  0x11   : > { %p638_p5 = scmp.lt.s32.totalorder %s153_s26, %s153_s26  ;;  %p639_p7 = scmp.lt.s32.totalorder %s630_s30, %s630_s30 }
  0x12   : > { %p876_p11 = pnand %p544_p9, %p847_p1 }
  0x13   : > { %p640_p10 = por %p639_p7, %p638_p5 }
  0x14   : > { %p621_p12 = pneg %p876_p11 }
  0x16   : > { %p633_p0 = pnand %p631_p13, %p621_p12 }
  0x18   : > { %p634_p3 = pneg %p633_p0 }
  0x1a   : > { %p641_p9 = pnand %p640_p10, %p634_p3 }
  0x1c   : > { %644 = shalt.err (!%p641_p9)
}
  0x1d   : > { %s1018_s4 = smov 128   ;;  %s788_s5 = smov 8  }
  0x1e   : > { %547 = dma.hbm_to_vmem [thread:$0]  (!%p876_p11), %s1015_s1, 512, %s153_s26, [#allocation6], %s1018_s4, %s1018_s4, %s788_s5  }
  0x1f   : > { %s656_s8 = scalar_lea.vmem %s168_s29, 512  ;;  %p664_p10 = scmp.lt.s32.totalorder %s168_s29, %s168_s29 }
  0x20   : > { %p657_p13 = scmp.ne.s32.totalorder %s168_s29, %s656_s8  ;;  %p665_p3 = scmp.lt.s32.totalorder %s656_s8, %s656_s8 }
  0x22   : > { %p659_p0 = pnand %p657_p13, %p621_p12  ;;  %p666_p7 = por %p665_p3, %p664_p10 }
  0x24   : > { %p660_p5 = pneg %p659_p0 }
  0x26   : > { %p667_p9 = pnand %p666_p7, %p660_p5 }
  0x28   : > { %670 = shalt.err (!%p667_p9)
}
  0x29   : > { %550 = dma.hbm_to_vmem [thread:$0]  (!%p876_p11), %s1016_s2, 512, %s168_s29, [#allocation6], %s1018_s4, %s1018_s4, %s788_s5  }
  0x2a   : > { %s29_s11 = sadd.s32 1, %s779_s16  ;;  %s41_s18 = sadd.s32 1, %s771_s14 }
  0x2b   : > { %p30_p12 = scmp.ge.s32.totalorder %s29_s11, 2  ;;  %p48_p13 = scmp.ne.s32.totalorder %s771_s14, %s767_s13 }
  0x2c   : > { %p49_p0 = scmp.eq.s32.totalorder %s783_s17, 0  ;;  %p561_p5 = scmp.lt.s32.totalorder %s783_s17, 2 }
  0x2d   : > { %s1036_s11 = smov (%p30_p12, %s29_s11), 0  ;;  %p914_p3 = por %p851_p2, %p48_p13 }
  0x2e   : > { %p50_p10 = por %p49_p0, %p48_p13  ;;  %s36_s25 = ssub.s32 %s779_s16, %s1036_s11 }
  0x2f   : > { %s181_s26 = sand.u32 1, %s771_s14   ;;  %p39_p7 = scmp.eq.s32.totalorder %s36_s25, 0 }
  0x30   : > { %s483_s27 = sshll.u32 %s181_s26, 5  ;;  %s500_s28 = sshll.u32 %s779_s16, 9 }
  0x31   : > { %s923_s29 = scalar_select %p39_p7, %s771_s14, %s41_s18  }
  0x32   : > { %s192_s7 = scalar_lea.hbm %s1014_s0, %s500_s28  ;;  %s185_s8 = scalar_lea.vmem [#allocation2], %s483_s27 }
  0x33   : > { %s193_s9 = sshll.u32 %s185_s8, 4  ;;  %p930_p11 = pnand %p561_p5, %p50_p10  ;;  %s194_s9 = int_to_ptr.vmem [resolvable:$true] %s193_s9 }
  0x34   : > { %s182_s10 = scalar_lea.sflag [#allocation3], %s181_s26  ;;  %s684_s25 = scalar_lea.vmem %s194_s9, 512 }
  0x35   : > { %p673_p2 = pneg %p930_p11  ;;  %p685_p9 = scmp.ne.s32.totalorder %s194_s9, %s684_s25 }
  0x36   : > { %s789_s18 = smov [#allocation2]  }
  0x37   : > { %p687_p12 = pnand %p685_p9, %p673_p2  ;;  %s689_s4 = sshll.u32 %s789_s18, 4  ;;  %s690_s4 = int_to_ptr.vmem [resolvable:$false] %s689_s4 }
  0x38   : > { %s691_s28 = scalar_lea.vmem %s690_s4, 1024  ;;  %p692_p0 = scmp.lt.s32.totalorder %s194_s9, %s690_s4 }
  0x39   : > { %p688_p13 = pneg %p687_p12  ;;  %p693_p7 = scmp.lt.s32.totalorder %s691_s28, %s684_s25 }
  0x3b   : > { %p694_p6 = por %p693_p7, %p692_p0 }
  0x3d   : > { %p695_p5 = pnand %p694_p6, %p688_p13 }
  0x3f   : > { %698 = shalt.err (!%p695_p5)
}
  0x40   : > { %s1027_s27 = smov 128   ;;  %205 = sbr.rel (%p867_p8) target bundleno = 293 (0x125), region = 32 }
  0x41   : > { %554 = dma.hbm_to_vmem [thread:$0]  (!%p930_p11), %s192_s7, 512, %s194_s9, %s182_s10, %s1027_s27, %s1027_s27, %s788_s5  }
  0x42   : > { %s944_s26 = sand.u32 (!%p867_p8), 1, %s767_s13  }
  0x43   : > { %s487_s4 = sshll.u32 (!%p867_p8), %s944_s26, 5  ;;  %s208_s30 = scalar_lea.sflag (!%p867_p8), [#allocation3], %s944_s26 }
  0x44   : > { %s211_s6 = scalar_lea.vmem (!%p867_p8), [#allocation2], %s487_s4 }
  0x45   : > { %750 = dma.done.wait (%p857_p4), %s208_s30, 512  }
  0x46   : > { %752 = vsyncadd (%p857_p4), %s208_s30, 4294966784 }
  0x47   : > { %754 = dma.done.wait (%p847_p1), [#allocation6], 1024  }
  0x48   : > { %756 = vsyncadd (%p847_p1), [#allocation6], 4294966272  ;;  %v245_v0 = vld [vmem:[%s211_s6 + $0x18] sm:$0xff]  ;;  %v244_v1 = vld [vmem:[%s211_s6 + $0x10] sm:$0xff]  ;;  %vm254_vm0 = vcmask 261120   ;;  %s241_s20 = scalar_lea.vmem [#allocation8], %s487_s4 }
  0x49   : > { %510 = vmatprep.subr.mxu0 %v245_v0  ;;  %524 = vmatprep.subr.mxu1 %v245_v0  ;;  %v243_v2 = vld [vmem:[%s211_s6 + $0x8] sm:$0xff]  ;;  %v242_v3 = vld [vmem:[%s211_s6] sm:$0xff]  ;;  %v248_v5 = vld [vmem:[#allocation5 + $0x10] sm:$0xff]  ;;  %s371_s22 = sshll.u32 %s241_s20, 4  ;;  %s501_s24 = sshll.u32 %s775_s15, 9  ;;  %s961_s22 = int_to_ptr.vmem [resolvable:$true] %s371_s22 }
  0x4a   : > { %511 = vmatpush3.msra.mxu0 %v245_v0  ;;  %528 = vmatpush3.msra.mxu1 %v245_v0  ;;  %v246_v4 = vld [vmem:[#allocation5] sm:$0xff]  ;;  %v247_v6 = vld [vmem:[#allocation5 + $0x8] sm:$0xff]  ;;  %v249_v7 = vld [vmem:[#allocation5 + $0x18] sm:$0xff]  ;;  %s966_s8 = scalar_lea.hbm %s1017_s3, %s501_s24  ;;  %s357_s15 = scalar_lea.sflag [#allocation4], %s944_s26 }
  0x4b   : > { %512 = vmatprep.subr.mxu0 %v244_v1  ;;  %525 = vmatprep.subr.mxu1 %v244_v1  ;;  %v251_v8 = vld [vmem:[#allocation7 + $0x8] sm:$0xff]  ;;  %v253_v9 = vld [vmem:[#allocation7 + $0x18] sm:$0xff]  ;;  %v250_v12 = vld [vmem:[#allocation7] sm:$0xff]  ;;  %s699_s9 = scalar_lea.vmem %s961_s22, 512  ;;  %s790_s21 = smov [#allocation8]  }
  0x4c   : > { %513 = vmatpush3.msra.mxu0 %v244_v1  ;;  %529 = vmatpush3.msra.mxu1 %v244_v1  ;;  %v252_v13 = vld [vmem:[#allocation7 + $0x10] sm:$0xff]  ;;  %p700_p1 = scmp.ne.s32.totalorder %s961_s22, %s699_s9  ;;  %s703_s10 = sshll.u32 %s790_s21, 4  ;;  %s704_s10 = int_to_ptr.vmem [resolvable:$false] %s703_s10 }
  0x4d   : > { %514 = vmatprep.subr.mxu0 %v243_v2  ;;  %526 = vmatprep.subr.mxu1 %v243_v2  ;;  %s705_s25 = scalar_lea.vmem %s704_s10, 1024  ;;  %p706_p8 = scmp.lt.s32.totalorder %s961_s22, %s704_s10 }
  0x4e   : > { %515 = vmatpush3.msra.mxu0 %v243_v2  ;;  %530 = vmatpush3.msra.mxu1 %v243_v2  ;;  %p701_p4 = pnand %p700_p1, %p914_p3  ;;  %p707_p10 = scmp.lt.s32.totalorder %s705_s25, %s699_s9 }
  0x4f   : > { %516 = vmatprep.subr.mxu0 %v242_v3  ;;  %527 = vmatprep.subr.mxu1 %v242_v3 }
  0x50   : > { %517 = vmatpush3.msra.mxu0 %v242_v3  ;;  %531 = vmatpush3.msra.mxu1 %v242_v3  ;;  %p702_p6 = pneg %p701_p4  ;;  %p708_p11 = por %p707_p10, %p706_p8 }
  0x51   : > { %518 = vmatprep.mubr.msk.f32.mxu0 %vm254_vm0, %v246_v4  ;;  %521 = vmatprep.mubr.msk.f32.mxu1 %vm254_vm0, %v248_v5 }
  0x52   : > { %519 = vmatmul.mubr.msk.f32.vlgmr.msra.gmra.mxu0 %vm254_vm0, %v247_v6  ;;  %522 = vmatmul.mubr.msk.f32.vlgmr.msra.gmra.mxu1 %vm254_vm0, %v249_v7  ;;  %p709_p2 = pnand %p708_p11, %p702_p6 }
 0x112   : > { %v520_v10 = vpop.f32.mrf.mxu0  ;;  %v523_v11 = vpop.f32.mrf.mxu1 }
 0x113   : > { %v339_v14 = vadd.f32 %v520_v10, %v251_v8  ;;  %v349_v15 = vadd.f32 %v523_v11, %v253_v9 }
 0x114   : > { %v333_v16 = vpop.f32.mrf.mxu0  ;;  %v343_v17 = vpop.f32.mrf.mxu1 }
 0x115   : > { %353 = vst [vmem:[%s241_s20 + $0x8] sm:$0xff] %v339_v14  ;;  %355 = vst [vmem:[%s241_s20 + $0x18] sm:$0xff] %v349_v15  ;;  %v334_v18 = vadd.f32 %v333_v16, %v250_v12  ;;  %v344_v19 = vadd.f32 %v343_v17, %v252_v13 }
 0x117   : > { %352 = vst [vmem:[%s241_s20] sm:$0xff] %v334_v18  ;;  %354 = vst [vmem:[%s241_s20 + $0x10] sm:$0xff] %v344_v19 }
 0x118   : > { %712 = shalt.err (!%p709_p2)
}
 0x119   : > { %s713_s18 = scalar_lea.hbm %s966_s8, 512  ;;  %s717_s4 = scalar_lea.hbm %s1017_s3, 1024 }
 0x11a   : > { %p714_p9 = scmp.ne.s32.totalorder %s966_s8, %s713_s18  ;;  %p718_p0 = scmp.lt.s32.totalorder %s966_s8, %s1017_s3 }
 0x11b   : > { %p719_p7 = scmp.lt.s32.totalorder %s717_s4, %s713_s18 }
 0x11c   : > { %p715_p12 = pnand %p714_p9, %p914_p3 }
 0x11d   : > { %p720_p5 = por %p719_p7, %p718_p0 }
 0x11e   : > { %p716_p13 = pneg %p715_p12 }
 0x120   : > { %p721_p1 = pnand %p720_p5, %p716_p13 }
 0x122   : > { %724 = shalt.err (!%p721_p1)
}
 0x123   : > { %s791_s20 = smov 128   ;;  %s792_s24 = smov 8  }
 0x124   : > { %542 = dma.vmem_to_hbm [thread:$0]  (%p914_p3), %s961_s22, 512, %s966_s8, %s357_s15, %s791_s20, %s791_s20, %s792_s24  }
 0x125 PF: > { %s386_s5 = sand.u32 1, %s763_s12   ;;  %p1028_p4 = scmp.ne.s32.totalorder %s1022_s23, 0 }
 0x126   : > { %p1029_p6 = scmp.ge.s32.totalorder %s783_s17, 2  ;;  %s387_s7 = scalar_lea.sflag [#allocation4], %s386_s5 }
 0x128   : > { %p556_p8 = pnand %p1029_p6, %p1028_p4 }
 0x12a   : > { %p557_p10 = pneg %p556_p8 }
 0x12c   : > { %758 = dma.done.wait (%p557_p10), %s387_s7, 512  }
 0x12d   : > { %760 = vsyncadd (%p557_p10), %s387_s7, 4294966784  ;;  %s20_s17 = sadd.s32 1, %s783_s17   ;;  %s1030_s12 = smov %s767_s13 }
 0x12e   : > { %p17_p11 = scmp.ge.s32.totalorder %s20_s17, 4   ;;  %s1031_s13 = smov %s771_s14 }
 0x12f   : > { %s1032_s14 = smov %s923_s29  ;;  %s1033_s15 = smov %s779_s16 }
 0x130   : > { %s1034_s16 = smov %s1036_s11  ;;  %19 = sbr.rel (!%p17_p11) target bundleno = 7 (0x7), region = 86 }
 0x135   :  { %392 = vsyncpa [#allocation3], 1 }
 0x136   :  { %394 = vsyncpa [#allocation3 + $0x1], 1 }
 0x137   :  { %395 = vsyncpa [#allocation6], 1 }
 0x138   :  { %396 = vsyncpa [#allocation4], 1 }
 0x139   :  { %398 = vsyncpa [#allocation4 + $0x1], 1 }

</bundles_post_ra>
